<compile_context>
chip_gen: v5e
topology: v5e:2x2
jax: 0.10.0
libtpu: 0.0.40
codegen_flags: <defaults>
</compile_context>

<pallas_src>
import functools

import jax
import jax.numpy as jnp
from jax.experimental import pallas as pl
from jax.experimental.pallas import tpu as pltpu


# --------------------------------------------------------------------------
# Kernel
# --------------------------------------------------------------------------

def _masked_mse_kernel(n_rows, has_mask, *refs):
    """Accumulates per-core partial sums of squared error (and mask count).

    refs (has_mask=True):  pred_ref, true_ref, mask_ref, out_ref
    refs (has_mask=False): pred_ref, true_ref,            out_ref

    pred_ref/true_ref : (block_rows, width) input tiles (cast to f32)
    mask_ref          : (block_rows, 1) f32 per-row mask
    out_ref           : (1, 1, 128) resident partial-sum block for this core:
                        lane 0 = sum of squared error, lane 1 = sum of mask.
    """
    if has_mask:
        pred_ref, true_ref, mask_ref, out_ref = refs
    else:
        pred_ref, true_ref, out_ref = refs

    c = pl.program_id(0)            # core-split axis ("parallel")
    j = pl.program_id(1)            # sequential reduction axis ("arbitrary")
    bpc = pl.num_programs(1)        # blocks per core

    @pl.when(j == 0)
    def _init():
        out_ref[...] = jnp.zeros_like(out_ref)

    block_rows = pred_ref.shape[0]
    # Global row ids of this tile; rows >= n_rows are ragged-tail / dummy rows
    # (Pallas does not zero out-of-bounds input data) -> mask them to zero.
    row_start = (c * bpc + j) * block_rows
    row_ids = jax.lax.broadcasted_iota(jnp.int32, (block_rows, 1), 0) + row_start
    valid = row_ids < n_rows                                   # (block_rows, 1)

    diff = pred_ref[...].astype(jnp.float32) - true_ref[...].astype(jnp.float32)
    sq = diff * diff                                           # (block_rows, width)
    row_sums = jnp.sum(sq, axis=1, keepdims=True)              # (block_rows, 1)
    row_sums = jnp.where(valid, row_sums, 0.0)                 # kill garbage rows

    if has_mask:
        m = jnp.where(valid, mask_ref[...].astype(jnp.float32), 0.0)
        blk_sq = jnp.sum(row_sums * m, axis=0, keepdims=True)  # (1, 1)
        blk_m = jnp.sum(m, axis=0, keepdims=True)              # (1, 1)
    else:
        blk_sq = jnp.sum(row_sums, axis=0, keepdims=True)      # (1, 1)
        blk_m = None

    lane = jax.lax.broadcasted_iota(jnp.int32, out_ref.shape, 2)   # (1,1,128)
    upd = jnp.where(lane == 0, blk_sq, 0.0)
    if has_mask:
        upd = upd + jnp.where(lane == 1, blk_m, 0.0)
    out_ref[...] += upd


# --------------------------------------------------------------------------
# Wrapper
# --------------------------------------------------------------------------

_NUM_CORE_SPLITS = 2           # shards streaming across the 2 TCs on v7x;
                               # harmless (sequential) on 1-TC v5e / v6e.
_PIPE_VMEM_BUDGET = 24 << 20   # budget for double-buffered input tiles


def _round_up(a, m):
    return (a + m - 1) // m * m


def _cdiv(a, b):
    return -(-a // b)


@jax.jit
def masked_mse_loss(y_pred, y_true, mask=None):
    """Pallas equivalent of MSEWithMask.forward. Returns {'loss', 'mse_loss'}."""
    assert y_pred.shape == y_true.shape, (y_pred.shape, y_true.shape)
    *lead, d = y_pred.shape
    n = 1
    for s in lead:
        n *= s
    total = n * d
    assert total > 0, "MSEWithMask on an empty tensor"
    has_mask = mask is not None
    if has_mask:
        assert mask.shape == tuple(lead), (mask.shape, lead)

    # ---- choose the 2-D view streamed by the kernel ----------------------
    if has_mask:
        # Per-row mask -> must keep (rows, feature) layout.
        rows, width = n, d
        pred2 = y_pred.reshape(rows, width)
        true2 = y_true.reshape(rows, width)
        mask2 = mask.reshape(rows, 1).astype(jnp.float32)
    else:
        # Lane-dense repack: view the flat element stream as (M, W) with a
        # 128-multiple W when possible (free reshape, no pad, no copy), so
        # small d (e.g. 32) doesn't waste 3/4 of every vreg and VMEM tile.
        width = d
        for w in (1024, 512, 256, 128):
            if total % w == 0:
                width = w
                break
        rows = total // width
        pred2 = y_pred.reshape(rows, width)
        true2 = y_true.reshape(rows, width)
        mask2 = None

    # ---- tile sizing (dtype- and lane-padding-aware) ----------------------
    item_p = jnp.dtype(y_pred.dtype).itemsize
    item_t = jnp.dtype(y_true.dtype).itemsize
    sub = max(8, 32 // min(item_p, item_t))        # 8 f32 / 16 bf16 / 32 int8
    lane_w = _round_up(width, 128)                 # lanes are padded to 128
    per_row_bytes = lane_w * (item_p + item_t) + (128 * 4 if has_mask else 0)

    cap = max(sub, (_PIPE_VMEM_BUDGET // (2 * per_row_bytes)) // sub * sub)
    # Aim for >= _NUM_CORE_SPLITS blocks so both cores get work when possible.
    target = _round_up(_cdiv(rows, _NUM_CORE_SPLITS), sub)
    block_rows = min(cap, target)
    if block_rows >= rows:
        block_rows = rows            # single block == full dim (always legal)

    n_blocks = _cdiv(rows, block_rows)
    bpc = _cdiv(n_blocks, _NUM_CORE_SPLITS)        # blocks per core
    grid = (_NUM_CORE_SPLITS, bpc)

    def data_map(c, j):
        # Dummy / overhanging (core, j) pairs are clamped to a real block; the
        # kernel's row-id mask zeroes their contribution.
        return (jnp.minimum(c * bpc + j, n_blocks - 1), 0)

    in_specs = [
        pl.BlockSpec((block_rows, width), data_map),
        pl.BlockSpec((block_rows, width), data_map),
    ]
    args = [pred2, true2]
    if has_mask:
        in_specs.append(pl.BlockSpec((block_rows, 1), data_map))
        args.append(mask2)

    out_spec = pl.BlockSpec((1, 1, 128), lambda c, j: (c, 0, 0))

    bytes_accessed = (pred2.size * item_p + true2.size * item_t
                      + (n * 4 if has_mask else 0)
                      + _NUM_CORE_SPLITS * 128 * 4)
    cost = pl.CostEstimate(flops=3 * total, transcendentals=0,
                           bytes_accessed=int(bytes_accessed))

    vmem_need = 2 * _round_up(block_rows, sub) * per_row_bytes   # dbl-buffered inputs
    vmem_limit = int(min(48 << 20, max(vmem_need + (8 << 20), 32 << 20)))

    kernel = functools.partial(_masked_mse_kernel, rows, has_mask)

    partials = pl.pallas_call(
        kernel,
        out_shape=jax.ShapeDtypeStruct((_NUM_CORE_SPLITS, 1, 128), jnp.float32),
        grid=grid,
        in_specs=in_specs,
        out_specs=out_spec,
        compiler_params=pltpu.CompilerParams(
            dimension_semantics=("parallel", "arbitrary"),
            vmem_limit_bytes=vmem_limit),
        cost_estimate=cost,
    )(*args)

    sum_sq = jnp.sum(partials[:, 0, 0])
    if has_mask:
        denom = jnp.sum(partials[:, 0, 1]) * jnp.float32(d)   # == mask_expanded.sum()
    else:
        denom = jnp.float32(total)
    loss = sum_sq / denom
    return {"loss": loss, "mse_loss": loss}


# --------------------------------------------------------------------------

if __name__ == "__main__":
    key = jax.random.PRNGKey(0)
    k1, k2, k3 = jax.random.split(key, 3)

    B, S, D = 2, 8, 32
    y_pred = jax.random.normal(k1, (B, S, D), jnp.float32)
    y_true = jax.random.normal(k2, (B, S, D), jnp.float32)
    mask = (jax.random.uniform(k3, (B, S)) > 0.3).astype(jnp.float32)

    out_m = masked_mse_loss(y_pred, y_true, mask)
    out_p = masked_mse_loss(y_pred, y_true, None)
    loss_m = jax.block_until_ready(out_m["loss"])
    loss_p = jax.block_until_ready(out_p["loss"])

    # Pure-JAX reference matching the torch module exactly.
    sq = (y_pred - y_true) ** 2
    mask_expanded = jnp.broadcast_to(mask[..., None], sq.shape)
    ref_m = (sq * mask_expanded).sum() / mask_expanded.sum()
    ref_p = sq.mean()

    assert jnp.allclose(out_m["mse_loss"], out_m["loss"])
    assert jnp.isfinite(loss_m) and jnp.isfinite(loss_p)
    assert jnp.allclose(loss_m, ref_m, rtol=1e-5, atol=1e-6), (loss_m, ref_m)
    assert jnp.allclose(loss_p, ref_p, rtol=1e-5, atol=1e-6), (loss_p, ref_p)

    # Exercise the sub-32-bit (bf16) sublane / repack path as well.
    y_pred_bf = y_pred.astype(jnp.bfloat16)
    y_true_bf = y_true.astype(jnp.bfloat16)
    loss_bf = jax.block_until_ready(masked_mse_loss(y_pred_bf, y_true_bf, None)["loss"])
    ref_bf = ((y_pred_bf.astype(jnp.float32) - y_true_bf.astype(jnp.float32)) ** 2).mean()
    assert jnp.allclose(loss_bf, ref_bf, rtol=1e-3, atol=1e-4), (loss_bf, ref_bf)

    print("KERNEL_OK")
</pallas_src>

<mosaic_0001>
module attributes {stable_mosaic.version = 11 : i64} {
  func.func @_masked_mse_kernel(%arg0: i32, %arg1: i32, %arg2: memref<8x32xf32, #tpu.memory_space<vmem>>, %arg3: memref<8x32xf32, #tpu.memory_space<vmem>>, %arg4: memref<8x1xf32, #tpu.memory_space<vmem>>, %arg5: memref<1x1x128xf32, #tpu.memory_space<vmem>>) attributes {dimension_semantics = [#tpu.dimension_semantics<parallel>, #tpu.dimension_semantics<arbitrary>], iteration_bounds = array<i64: 2, 1>, scalar_prefetch = 0 : i64, scratch_operands = 0 : i64, tpu.core_type = #tpu.core_type<tc>, window_params = [{transform_indices = @transform_0, window_bounds = array<i64: 8, 32>}, {transform_indices = @transform_1, window_bounds = array<i64: 8, 32>}, {transform_indices = @transform_2, window_bounds = array<i64: 8, 1>}, {transform_indices = @transform_3, window_bounds = array<i64: 1, 1, 128>}]} {
    %c0_i32 = arith.constant 0 : i32
    %0 = arith.cmpi eq, %arg1, %c0_i32 : i32
    %1 = arith.extui %0 : i1 to i32
    %c0_i32_0 = arith.constant 0 : i32
    %2 = arith.cmpi ne, %1, %c0_i32_0 : i32
    scf.if %2 {
      %cst_20 = arith.constant 0.000000e+00 : f32
      %44 = vector.broadcast %cst_20 : f32 to vector<1x1x128xf32>
      %c0_21 = arith.constant 0 : index
      %c0_22 = arith.constant 0 : index
      %c0_23 = arith.constant 0 : index
      %45 = vector.load %arg5[%c0_21, %c0_22, %c0_23] : memref<1x1x128xf32, #tpu.memory_space<vmem>>, vector<1x1x128xf32>
      tpu.vector_store %arg5[%c0_21, %c0_22, %c0_23], %44 {strides = array<i32>} : memref<1x1x128xf32, #tpu.memory_space<vmem>>, vector<1x1x128xf32>,
    } else {
    }
    %c1_i32 = arith.constant 1 : i32
    %3 = arith.muli %arg0, %c1_i32 : i32
    %4 = arith.addi %3, %arg1 : i32
    %c8_i32 = arith.constant 8 : i32
    %5 = arith.muli %4, %c8_i32 : i32
    %6 = tpu.iota {dimensions = array<i32: 0>} : vector<8x1xi32>
    %7 = vector.broadcast %5 : i32 to vector<8x1xi32>
    %8 = arith.addi %6, %7 : vector<8x1xi32>
    %c16_i32 = arith.constant 16 : i32
    %9 = vector.broadcast %c16_i32 : i32 to vector<8x1xi32>
    %10 = arith.cmpi slt, %8, %9 : vector<8x1xi32>
    %c0 = arith.constant 0 : index
    %c0_1 = arith.constant 0 : index
    %11 = vector.load %arg2[%c0, %c0_1] : memref<8x32xf32, #tpu.memory_space<vmem>>, vector<8x32xf32>
    %c0_2 = arith.constant 0 : index
    %c0_3 = arith.constant 0 : index
    %12 = vector.load %arg3[%c0_2, %c0_3] : memref<8x32xf32, #tpu.memory_space<vmem>>, vector<8x32xf32>
    %13 = arith.subf %11, %12 : vector<8x32xf32>
    %14 = arith.mulf %13, %13 : vector<8x32xf32>
    %cst = arith.constant dense<0.000000e+00> : vector<8xf32>
    %15 = vector.multi_reduction <add>, %14, %cst [1] : vector<8x32xf32> to vector<8xf32>
    %16 = vector.shape_cast %15 : vector<8xf32> to vector<8x1xf32>
    %cst_4 = arith.constant 0.000000e+00 : f32
    %17 = vector.broadcast %cst_4 : f32 to vector<8x1xf32>
    %18 = arith.select %10, %16, %17 : vector<8x1xi1>, vector<8x1xf32>
    %c0_5 = arith.constant 0 : index
    %c0_6 = arith.constant 0 : index
    %19 = vector.load %arg4[%c0_5, %c0_6] : memref<8x1xf32, #tpu.memory_space<vmem>>, vector<8x1xf32>
    %cst_7 = arith.constant 0.000000e+00 : f32
    %20 = vector.broadcast %cst_7 : f32 to vector<8x1xf32>
    %21 = arith.select %10, %19, %20 : vector<8x1xi1>, vector<8x1xf32>
    %22 = arith.mulf %18, %21 : vector<8x1xf32>
    %cst_8 = arith.constant dense<0.000000e+00> : vector<1xf32>
    %23 = vector.multi_reduction <add>, %22, %cst_8 [0] : vector<8x1xf32> to vector<1xf32>
    %24 = vector.shape_cast %23 : vector<1xf32> to vector<1x1xf32>
    %cst_9 = arith.constant dense<0.000000e+00> : vector<1xf32>
    %25 = vector.multi_reduction <add>, %21, %cst_9 [0] : vector<8x1xf32> to vector<1xf32>
    %26 = vector.shape_cast %25 : vector<1xf32> to vector<1x1xf32>
    %27 = tpu.iota {dimensions = array<i32: 2>} : vector<1x1x128xi32>
    %c0_i32_10 = arith.constant 0 : i32
    %28 = vector.broadcast %c0_i32_10 : i32 to vector<1x1x128xi32>
    %29 = arith.cmpi eq, %27, %28 : vector<1x1x128xi32>
    %cst_11 = arith.constant 0.000000e+00 : f32
    %30 = vector.shape_cast %24 : vector<1x1xf32> to vector<1x1x1xf32>
    %31 = vector.broadcast %30 : vector<1x1x1xf32> to vector<1x1x128xf32>
    %32 = vector.broadcast %cst_11 : f32 to vector<1x1x128xf32>
    %33 = arith.select %29, %31, %32 : vector<1x1x128xi1>, vector<1x1x128xf32>
    %c1_i32_12 = arith.constant 1 : i32
    %34 = vector.broadcast %c1_i32_12 : i32 to vector<1x1x128xi32>
    %35 = arith.cmpi eq, %27, %34 : vector<1x1x128xi32>
    %cst_13 = arith.constant 0.000000e+00 : f32
    %36 = vector.shape_cast %26 : vector<1x1xf32> to vector<1x1x1xf32>
    %37 = vector.broadcast %36 : vector<1x1x1xf32> to vector<1x1x128xf32>
    %38 = vector.broadcast %cst_13 : f32 to vector<1x1x128xf32>
    %39 = arith.select %35, %37, %38 : vector<1x1x128xi1>, vector<1x1x128xf32>
    %40 = arith.addf %33, %39 : vector<1x1x128xf32>
    %c0_14 = arith.constant 0 : index
    %c0_15 = arith.constant 0 : index
    %c0_16 = arith.constant 0 : index
    %41 = vector.load %arg5[%c0_14, %c0_15, %c0_16] : memref<1x1x128xf32, #tpu.memory_space<vmem>>, vector<1x1x128xf32>
    %42 = arith.addf %41, %40 : vector<1x1x128xf32>
    %c0_17 = arith.constant 0 : index
    %c0_18 = arith.constant 0 : index
    %c0_19 = arith.constant 0 : index
    %43 = vector.load %arg5[%c0_17, %c0_18, %c0_19] : memref<1x1x128xf32, #tpu.memory_space<vmem>>, vector<1x1x128xf32>
    tpu.vector_store %arg5[%c0_17, %c0_18, %c0_19], %42 {strides = array<i32>} : memref<1x1x128xf32, #tpu.memory_space<vmem>>, vector<1x1x128xf32>,
    return
  }
  func.func @transform_0(%arg0: i32, %arg1: i32) -> (i32, i32) {
    %c1_i32 = arith.constant 1 : i32
    %0 = arith.muli %arg0, %c1_i32 : i32
    %1 = arith.addi %0, %arg1 : i32
    %c1_i32_0 = arith.constant 1 : i32
    %2 = arith.minsi %1, %c1_i32_0 : i32
    %c0_i32 = arith.constant 0 : i32
    %c0_i32_1 = arith.constant 0 : i32
    return %2, %c0_i32 : i32, i32
  }
  func.func @transform_1(%arg0: i32, %arg1: i32) -> (i32, i32) {
    %c1_i32 = arith.constant 1 : i32
    %0 = arith.muli %arg0, %c1_i32 : i32
    %1 = arith.addi %0, %arg1 : i32
    %c1_i32_0 = arith.constant 1 : i32
    %2 = arith.minsi %1, %c1_i32_0 : i32
    %c0_i32 = arith.constant 0 : i32
    %c0_i32_1 = arith.constant 0 : i32
    return %2, %c0_i32 : i32, i32
  }
  func.func @transform_2(%arg0: i32, %arg1: i32) -> (i32, i32) {
    %c1_i32 = arith.constant 1 : i32
    %0 = arith.muli %arg0, %c1_i32 : i32
    %1 = arith.addi %0, %arg1 : i32
    %c1_i32_0 = arith.constant 1 : i32
    %2 = arith.minsi %1, %c1_i32_0 : i32
    %c0_i32 = arith.constant 0 : i32
    %c0_i32_1 = arith.constant 0 : i32
    return %2, %c0_i32 : i32, i32
  }
  func.func @transform_3(%arg0: i32, %arg1: i32) -> (i32, i32, i32) {
    %c0_i32 = arith.constant 0 : i32
    %c0_i32_0 = arith.constant 0 : i32
    %c0_i32_1 = arith.constant 0 : i32
    return %arg0, %c0_i32, %c0_i32_0 : i32, i32, i32
  }
}

</mosaic_0001>

<bundles_post_ra>
// kernel: masked_mse_loss.1
= control target key start
LH: loop header
LB: loop body
LE: loop exit
PB: predicated region body
PF: predicated region fallthrough
CT: control target
= control target key end

     0   :  { %8 = vsyncpa [#allocation3], 0  ;;  %s722_s0 = inlined_call_operand.vmem [shape: f32[16,32], index: 0, kind: input, shape index: {}]   ;;  %s723_s1 = inlined_call_operand.hbm [shape: f32[16,32], index: 1, kind: input, shape index: {}]   ;;  %s724_s2 = inlined_call_operand.vmem [shape: f32[16,1], index: 2, kind: input, shape index: {}]   ;;  %s725_s3 = inlined_call_operand.vmem [shape: f32[2,1,128], index: 3, kind: output, shape index: {}]  }
   0x1   :  { %10 = vsyncpa [#allocation3 + $0x1], 0  ;;  %s618_s12 = smov 0   ;;  %s620_s13 = smov 0  }
   0x2   :  { %s622_s14 = smov 0   ;;  %s624_s15 = smov 0  }
   0x3   :  { %s626_s16 = smov 0   ;;  %s628_s17 = smov 0  }
   0x4 LB: > { %s436_s18 = sadd.s32 4294967295, %s594_s17   ;;  %s28_s19 = sadd.s32 1, %s590_s16  ;;  %s594_s17 = sphi %s628_s17, %s16_s17   ;;  %s590_s16 = sphi %s626_s16, %s732_s16   ;;  %s586_s15 = sphi %s624_s15, %s731_s15   ;;  %s582_s14 = sphi %s622_s14, %s730_s14   ;;  %s578_s13 = sphi %s620_s13, %s729_s13   ;;  %s574_s12 = sphi %s618_s12, %s728_s12  }
   0x5   : > { %p30_p0 = scmp.ge.s32.totalorder %s28_s19, 2  ;;  %p65_p1 = scmp.lt.s32.totalorder %s590_s16, 1 }
   0x6   : > { %s73_s20 = sadd.s32 1, %s582_s14  ;;  %p80_p2 = scmp.ne.s32.totalorder %s582_s14, %s578_s13 }
   0x7   : > { %s734_s19 = smov (%p30_p0, %s28_s19), 0  ;;  %p81_p4 = scmp.eq.s32.totalorder %s594_s17, 0 }
   0x8   : > { %s66_s21 = scalar_select %p65_p1, %s590_s16, 1 }
   0x9   : > { %p68_p3 = scmp.lt.s32.totalorder %s734_s19, 1  ;;  %p86_p5 = scmp.ne.s32.totalorder %s578_s13, %s574_s12 }
   0xa   : > { %p87_p6 = scmp.eq.s32.totalorder %s436_s18, 0  ;;  %p659_p7 = por %p81_p4, %p80_p2 }
   0xb   : > { %s69_s22 = scalar_select %p68_p3, %s734_s19, 1 }
   0xc   : > { %p663_p8 = por %p87_p6, %p86_p5  ;;  %p461_p10 = scmp.lt.s32.totalorder %s594_s17, 2 }
   0xd   : > { %s70_s25 = ssub.s32 %s66_s21, %s69_s22  ;;  %s181_s26 = sand.u32 1, %s582_s14  }
   0xe   : > { %p71_p9 = scmp.eq.s32.totalorder %s70_s25, 0  ;;  %s441_s27 = sshll.u32 %s66_s21, 3 }
   0xf   : > { %s440_s29 = sshll.u32 %s181_s26, 3  ;;  %s192_s5 = scalar_lea.hbm %s723_s1, %s441_s27 }
  0x10   : > { %s670_s28 = scalar_select %p71_p9, %s582_s14, %s73_s20  }
  0x11   : > { %s194_s6 = sshll.u32 %s192_s5, 4  ;;  %s185_s7 = scalar_lea.vmem [#allocation2], %s440_s29  ;;  %s195_s6 = int_to_ptr.hbm [resolvable:$true] %s194_s6 }
  0x12   : > { %s196_s8 = sshll.u32 %s185_s7, 4  ;;  %p458_p11 = pnand %p461_p10, %p659_p7  ;;  %s197_s8 = int_to_ptr.vmem [resolvable:$true] %s196_s8 }
  0x13   : > { %p442_p12 = scmp.ge.s32.totalorder %s594_s17, 1  ;;  %p214_p13 = scmp.lt.s32.totalorder %s594_s17, 3 }
  0x14   : > { %s182_s9 = scalar_lea.sflag [#allocation3], %s181_s26 }
  0x15   : > { %460 = dma.hbm_to_vmem [thread:$0]  (!%p458_p11), %s195_s6, 128, %s197_s8, %s182_s9  }
  0x16   : > { %p215_p0 = pnand %p442_p12, %p214_p13 }
  0x17   : > { %s220_s10 = sand.u32 (!%p215_p0), 1, %s578_s13  }
  0x18   : > { %218 = sbr.rel (%p215_p0) target bundleno = 297 (0x129), region = 32  ;;  %s443_s11 = sshll.u32 (!%p215_p0), %s220_s10, 3 }
  0x19   : > { %s221_s12 = scalar_lea.sflag (!%p215_p0), [#allocation3], %s220_s10  ;;  %s224_s18 = scalar_lea.vmem (!%p215_p0), [#allocation2], %s443_s11 }
  0x1d   : > { %569 = dma.done.wait (%p663_p8), %s221_s12, 128  }
  0x1e   : > { %571 = vsyncadd (%p663_p8), %s221_s12, 4294967168  ;;  %p261_p1 = scmp.lt.s32.totalorder %s586_s15, 1  ;;  %v299_v0 = vld [vmem:[%s224_s18] sm:$0xff]  ;;  %vm302_vm0 = vcmask 261120   ;;  %v293_v5 = vlaneseq  ;;  %s452_s24 = sshll.u32 %s586_s15, 3  ;;  %vm310_vm2 = vcmask 7168  }
  0x1f   : > { %v295_v7 = vstv %s452_s24  ;;  %v596_v15 = vmov 0   ;;  %v597_v29 = vmov 0.0  }
  0x20   : > { %s686_s20 = scalar_select %p261_p1, %s586_s15, 1  ;;  %v294_v6 = vshrl.u32 %v293_v5, 7  ;;  %513 = vset.pattern.permute.xlu1 %v596_v15  ;;  %512 = vset.pattern.permute.xlu0 %v596_v15  ;;  %v326_v30 = vand.u32 127, %v293_v5 }
  0x22   : > { %s264_s21 = scalar_select %p261_p1, %s686_s20, 1  ;;  %v296_v8 = vadd.s32 %v295_v7, %v294_v6  ;;  %vm334_vm3 = vcmp.eq.s32.totalorder %v326_v30, 1  ;;  %vm327_vm4 = vcmp.eq.s32.totalorder %v326_v30, 0 }
  0x23   : > { %s285_s5 = scalar_lea.vmem %s725_s3, %s686_s20 }
  0x24   : > { %s447_s22 = sshll.u32 %s264_s21, 3  ;;  %vm297_vm1 = vcmp.lt.s32.totalorder %v296_v8, 16  ;;  %290 = vst [vmem:[%s285_s5] sm:$0x1] %v597_v29 }
  0x25   : > { %s266_s26 = scalar_lea.vmem %s722_s0, %s447_s22  ;;  %s279_s30 = scalar_lea.vmem %s724_s2, %s447_s22 }
  0x26   : > { %v298_v1 = vld [vmem:[%s266_s26] sm:$0xff] }
  0x27   : > { %v300_v2 = vsub.f32 %v298_v1, %v299_v0  ;;  %v307_v9 = vld [vmem:[%s279_s30] sm:$0xff] }
  0x28   : > { %v308_v10 = vsel %vm297_vm1, %v307_v9, 0.0 }
  0x29   : > { %v301_v3 = vmul.f32 %v300_v2, %v300_v2  ;;  %v318_v11 = vsel %vm310_vm2, %v308_v10, 0.0 }
  0x2a   : > { %v319_v12 = vrot.slane %v318_v11, 4 }
  0x2b   : > { %v303_v4 = vsel %vm302_vm0, %v301_v3, 0.0  ;;  %v342_v35 = vld [vmem:[%s285_s5] sm:$0x1] }
  0x2c   : > { %304 = vadd.xlane.f32.xlu0 %v303_v4  ;;  %v320_v13 = vadd.f32 %v319_v12, %v318_v11 }
  0x2e   : > { %v321_v14 = vrot.slane %v320_v13, 2 }
  0x30   : > { %v322_v16 = vadd.f32 %v321_v14, %v320_v13 }
  0x32   : > { %v323_v17 = vrot.slane %v322_v16, 1 }
  0x34   : > { %v324_v18 = vadd.f32 %v323_v17, %v322_v16 }
  0x36   : > { %337 = vperm.xlu1 %513, %v324_v18  }
  0x9f   : > { %v305_v19 = vpop.xlane.xlu0 %304 }
  0xa0   : > { %v306_v20 = vsel %vm297_vm1, %v305_v19, 0.0 }
  0xa1   : > { %v309_v21 = vmul.f32 %v308_v10, %v306_v20 }
  0xa3   : > { %v311_v22 = vsel %vm310_vm2, %v309_v21, 0.0 }
  0xa4   : > { %v312_v23 = vrot.slane %v311_v22, 4 }
  0xa6   : > { %v313_v24 = vadd.f32 %v312_v23, %v311_v22 }
  0xa8   : > { %v314_v25 = vrot.slane %v313_v24, 2  ;;  %v338_v31 = vpop.permute.xlu1 %337 }
  0xa9   : > { %v340_v32 = vsel %vm334_vm3, %v338_v31, 0.0 }
  0xaa   : > { %v315_v26 = vadd.f32 %v314_v25, %v313_v24 }
  0xac   : > { %v316_v27 = vrot.slane %v315_v26, 1 }
  0xae   : > { %v317_v28 = vadd.f32 %v316_v27, %v315_v26 }
  0xb0   : > { %330 = vperm.xlu0 %512, %v317_v28  }
 0x122   : > { %v331_v33 = vpop.permute.xlu0 %330 }
 0x123   : > { %v333_v34 = vsel %vm327_vm4, %v331_v33, 0.0 }
 0x124   : > { %v341_v36 = vadd.f32 %v340_v32, %v333_v34 }
 0x126   : > { %v343_v37 = vadd.f32 %v342_v35, %v341_v36 }
 0x128   : > { %344 = vst [vmem:[%s285_s5] sm:$0x1] %v343_v37 }
 0x129 PF: > { %s16_s17 = sadd.s32 1, %s594_s17   ;;  %s728_s12 = smov %s578_s13 }
 0x12a   : > { %p13_p2 = scmp.ge.s32.totalorder %s16_s17, 4   ;;  %s729_s13 = smov %s582_s14 }
 0x12b   : > { %s730_s14 = smov %s670_s28  ;;  %s731_s15 = smov %s590_s16 }
 0x12c   : > { %s732_s16 = smov %s734_s19  ;;  %15 = sbr.rel (!%p13_p2) target bundleno = 4 (0x4), region = 82 }
 0x131   :  { %362 = vsyncpa [#allocation3], 1 }
 0x132   :  { %364 = vsyncpa [#allocation3 + $0x1], 1 }

</bundles_post_ra>
